<compile_context>
chip_gen: v7x
topology: tpu7x:2x2x1
jax: 0.10.0
libtpu: 0.0.40
codegen_flags: <defaults>
</compile_context>

<pallas_src>
import functools

import jax
import jax.numpy as jnp
from jax.experimental import pallas as pl
from jax.experimental.pallas import tpu as pltpu

EPS = 1e-5


def residual_block_kernel(x_ref, w1_ref, w2_ref, g1_ref, b1_ref, g2_ref, b2_ref,
                          o_ref, *, L, pad):
    """Lane-dense layout: activations are (C, N*L).

    x_ref : (C, N*L) f32            channels on sublanes, batch*length on lanes
    w*_ref: (C_out, (pad+1)*C_in)   pre-symmetrized, tap-fused conv weights
    g*/b* : (C, 1)                  BatchNorm affine params
    o_ref : (C, N*L) f32
    """
    x = x_ref[...]
    C, NL = x.shape

    # Position-within-sequence index; computed once, reused by both convs.
    col = jax.lax.broadcasted_iota(jnp.int32, (C, NL), 1) % L
    # Boundary masks for each tap shift (static tiny loop; K=3 -> one entry).
    masks = [(col >= s, col < (L - s)) for s in range(1, pad + 1)]

    def circ_taps(y):
        # Build the ((pad+1)*C, N*L) stacked matmul operand:
        #   [y, roll(+1)+roll(-1), roll(+2)+roll(-2), ...]  (per-sequence circular)
        # A per-sequence circular roll on the flat N*L lane axis is a global XLU
        # roll plus a fix-up of the N boundary columns via a select.
        pieces = [y]
        for s in range(1, pad + 1):
            m_pos, m_neg = masks[s - 1]
            pos = jnp.where(m_pos,
                            pltpu.roll(y, shift=s, axis=1),
                            pltpu.roll(y, shift=NL - L + s, axis=1))
            neg = jnp.where(m_neg,
                            pltpu.roll(y, shift=NL - s, axis=1),
                            pltpu.roll(y, shift=L - s, axis=1))
            pieces.append(pos + neg)  # symmetric taps share a weight -> add on VPU
        return jnp.concatenate(pieces, axis=0)

    def conv(y, w_ref):
        # One MXU matmul per conv layer (taps + batch fused).
        return jnp.dot(w_ref[...], circ_taps(y),
                       preferred_element_type=jnp.float32)

    def bn(y, g_ref, b_ref, apply_relu):
        # Training-mode BatchNorm1d, single pass: biased stats over (N, L) per channel.
        inv_n = 1.0 / NL
        mean = jnp.sum(y, axis=1, keepdims=True) * inv_n
        ex2 = jnp.sum(y * y, axis=1, keepdims=True) * inv_n
        var = ex2 - mean * mean
        scale = g_ref[...] * jax.lax.rsqrt(var + EPS)   # (C, 1)
        shift = b_ref[...] - mean * scale               # (C, 1)
        out = y * scale + shift
        return jnp.maximum(out, 0.0) if apply_relu else out

    h = bn(conv(x, w1_ref), g1_ref, b1_ref, apply_relu=True)
    h = bn(conv(h, w2_ref), g2_ref, b2_ref, apply_relu=False)
    # Residual add + final ReLU.  Dropout(p=0.0) -> identity.
    o_ref[...] = jnp.maximum(h + x, 0.0).astype(o_ref.dtype)


def _fuse_sym_weight(w, pad):
    """(Cout, Cin, K) PyTorch conv weight -> (Cout, (pad+1)*Cin) symmetric, tap-fused."""
    w_sym = 0.5 * (w + jnp.flip(w, axis=2))
    pieces = [w_sym[:, :, pad]] + [w_sym[:, :, pad - s] for s in range(1, pad + 1)]
    return jnp.concatenate(pieces, axis=1)


def residual_block(x, w1, w2, g1, b1, g2, b2):
    """x: (N, C, L); w1, w2: (C, C, K) PyTorch (out, in, taps) layout; g*, b*: (C,)."""
    N, C, L = x.shape
    K = w1.shape[-1]
    pad = (K - 1) // 2

    # Wrapper-side layout plumbing (XLA): lane-dense activations + fused weights.
    x_flat = jnp.transpose(x, (1, 0, 2)).reshape(C, N * L)
    w1_f = _fuse_sym_weight(w1, pad)
    w2_f = _fuse_sym_weight(w2, pad)
    g1_r = g1.reshape(C, 1)
    b1_r = b1.reshape(C, 1)
    g2_r = g2.reshape(C, 1)
    b2_r = b2.reshape(C, 1)

    vmem = pl.BlockSpec(memory_space=pltpu.MemorySpace.VMEM)
    out_flat = pl.pallas_call(
        functools.partial(residual_block_kernel, L=L, pad=pad),
        out_shape=jax.ShapeDtypeStruct((C, N * L), jnp.float32),
        in_specs=[vmem] * 7,
        out_specs=vmem,
        compiler_params=pltpu.CompilerParams(vmem_limit_bytes=32 * 1024 * 1024),
    )(x_flat, w1_f, w2_f, g1_r, b1_r, g2_r, b2_r)
    # TODO(synk): for large N*C*L, tile the N*L axis with a ("parallel",) grid (v7x
    # 2-TC sharding) and restructure BN stats as a cross-step accumulator reduction.
    return out_flat.reshape(C, N, L).transpose(1, 0, 2)


def reference_forward(x, w1, w2, g1, b1, g2, b2):
    """Pure-JAX reference mirroring the PyTorch module (for validation)."""
    pad = (w1.shape[-1] - 1) // 2

    def sym(w):
        return (w + jnp.flip(w, axis=2)) * 0.5

    def conv(inp, w):
        xp = jnp.pad(inp, ((0, 0), (0, 0), (pad, pad)), mode="wrap")  # circular
        return jax.lax.conv_general_dilated(
            xp, w, window_strides=(1,), padding="VALID",
            dimension_numbers=("NCH", "OIH", "NCH"),
            precision=jax.lax.Precision.HIGHEST)

    def bn(y, g, b):
        m = y.mean(axis=(0, 2), keepdims=True)
        v = ((y - m) ** 2).mean(axis=(0, 2), keepdims=True)
        return (y - m) / jnp.sqrt(v + EPS) * g.reshape(1, -1, 1) + b.reshape(1, -1, 1)

    out = jax.nn.relu(bn(conv(x, sym(w1)), g1, b1))
    out = bn(conv(out, sym(w2)), g2, b2) + x
    return jax.nn.relu(out)


if __name__ == "__main__":
    # batch, num_channels, sequence length, kernel_size  (N*L = 256 -> lane-dense)
    N, C, L, K = 2, 8, 128, 3

    key = jax.random.PRNGKey(0)
    kx, kw1, kw2, kg1, kb1, kg2, kb2 = jax.random.split(key, 7)

    x = jax.random.normal(kx, (N, C, L), dtype=jnp.float32)
    # conv weights: (out_channels, in_channels, kernel_size), bias=False
    w1 = 0.3 * jax.random.normal(kw1, (C, C, K), dtype=jnp.float32)
    w2 = 0.3 * jax.random.normal(kw2, (C, C, K), dtype=jnp.float32)
    # BatchNorm affine params (deterministic, non-trivial)
    g1 = 1.0 + 0.1 * jax.random.normal(kg1, (C,), dtype=jnp.float32)
    b1 = 0.1 * jax.random.normal(kb1, (C,), dtype=jnp.float32)
    g2 = 1.0 + 0.1 * jax.random.normal(kg2, (C,), dtype=jnp.float32)
    b2 = 0.1 * jax.random.normal(kb2, (C,), dtype=jnp.float32)

    out = residual_block(x, w1, w2, g1, b1, g2, b2)
    out = jax.block_until_ready(out)

    ref = jax.block_until_ready(reference_forward(x, w1, w2, g1, b1, g2, b2))
    assert out.shape == (N, C, L)
    assert jnp.allclose(out, ref, rtol=1e-2, atol=1e-2), (
        f"max abs err {jnp.max(jnp.abs(out - ref))}")

    print("KERNEL_OK")
</pallas_src>

<mosaic_0001>
module attributes {stable_mosaic.version = 11 : i64} {
  func.func @residual_block_kernel(%arg0: memref<8x256xf32, #tpu.memory_space<vmem>>, %arg1: memref<8x16xf32, #tpu.memory_space<vmem>>, %arg2: memref<8x16xf32, #tpu.memory_space<vmem>>, %arg3: memref<8x1xf32, #tpu.memory_space<vmem>>, %arg4: memref<8x1xf32, #tpu.memory_space<vmem>>, %arg5: memref<8x1xf32, #tpu.memory_space<vmem>>, %arg6: memref<8x1xf32, #tpu.memory_space<vmem>>, %arg7: memref<8x256xf32, #tpu.memory_space<vmem>>) attributes {dimension_semantics = [], scalar_prefetch = 0 : i64, scratch_operands = 0 : i64, tpu.core_type = #tpu.core_type<tc>} {
    %c0 = arith.constant 0 : index
    %c0_0 = arith.constant 0 : index
    %0 = vector.load %arg0[%c0, %c0_0] : memref<8x256xf32, #tpu.memory_space<vmem>>, vector<8x256xf32>
    %1 = tpu.iota {dimensions = array<i32: 1>} : vector<8x256xi32>
    %c128_i32 = arith.constant 128 : i32
    %c0_i32 = arith.constant 0 : i32
    %2 = arith.cmpi eq, %c128_i32, %c0_i32 : i32
    %c1_i32 = arith.constant 1 : i32
    %3 = arith.select %2, %c1_i32, %c128_i32 : i32
    %4 = vector.broadcast %3 : i32 to vector<8x256xi32>
    %5 = arith.remsi %1, %4 : vector<8x256xi32>
    %c0_i32_1 = arith.constant 0 : i32
    %6 = vector.broadcast %c0_i32_1 : i32 to vector<8x256xi32>
    %7 = arith.cmpi ne, %5, %6 : vector<8x256xi32>
    %c0_i32_2 = arith.constant 0 : i32
    %8 = vector.broadcast %c0_i32_2 : i32 to vector<8x256xi32>
    %9 = arith.cmpi slt, %5, %8 : vector<8x256xi32>
    %c0_i32_3 = arith.constant 0 : i32
    %10 = arith.cmpi slt, %3, %c0_i32_3 : i32
    %11 = vector.broadcast %10 : i1 to vector<8x256xi1>
    %12 = vector.broadcast %11 : vector<8x256xi1> to vector<8x256xi1>
    %13 = arith.xori %9, %12 : vector<8x256xi1>
    %14 = arith.andi %13, %7 : vector<8x256xi1>
    %15 = vector.broadcast %3 : i32 to vector<8x256xi32>
    %16 = arith.addi %5, %15 : vector<8x256xi32>
    %17 = arith.select %14, %16, %5 : vector<8x256xi1>, vector<8x256xi32>
    %c1_i32_4 = arith.constant 1 : i32
    %18 = vector.broadcast %c1_i32_4 : i32 to vector<8x256xi32>
    %19 = arith.cmpi sge, %17, %18 : vector<8x256xi32>
    %c127_i32 = arith.constant 127 : i32
    %20 = vector.broadcast %c127_i32 : i32 to vector<8x256xi32>
    %21 = arith.cmpi slt, %17, %20 : vector<8x256xi32>
    %c0_5 = arith.constant 0 : index
    %c0_6 = arith.constant 0 : index
    %22 = vector.load %arg1[%c0_5, %c0_6] : memref<8x16xf32, #tpu.memory_space<vmem>>, vector<8x16xf32>
    %c1_i32_7 = arith.constant 1 : i32
    %23 = tpu.dynamic_rotate %0 by %c1_i32_7 dim 1 : vector<8x256xf32>, i32 -> vector<8x256xf32>
    %c129_i32 = arith.constant 129 : i32
    %24 = tpu.dynamic_rotate %0 by %c129_i32 dim 1 : vector<8x256xf32>, i32 -> vector<8x256xf32>
    %25 = arith.select %19, %23, %24 : vector<8x256xi1>, vector<8x256xf32>
    %c255_i32 = arith.constant 255 : i32
    %26 = tpu.dynamic_rotate %0 by %c255_i32 dim 1 : vector<8x256xf32>, i32 -> vector<8x256xf32>
    %c127_i32_8 = arith.constant 127 : i32
    %27 = tpu.dynamic_rotate %0 by %c127_i32_8 dim 1 : vector<8x256xf32>, i32 -> vector<8x256xf32>
    %28 = arith.select %21, %26, %27 : vector<8x256xi1>, vector<8x256xf32>
    %29 = arith.addf %25, %28 : vector<8x256xf32>
    %30 = tpu.concatenate %0, %29 in 0 : vector<8x256xf32>, vector<8x256xf32> -> vector<16x256xf32>
    %cst = arith.constant dense<0.000000e+00> : vector<8x256xf32>
    %31 = tpu.matmul %22, %30, %cst {dimension_numbers = #tpu.dot_dimension_numbers<[1], [0], [0], [1], [0, 0, 1, 1], [], []>} : vector<8x16xf32>, vector<16x256xf32>, vector<8x256xf32> -> vector<8x256xf32>
    %cst_9 = arith.constant dense<0.000000e+00> : vector<8xf32>
    %32 = vector.multi_reduction <add>, %31, %cst_9 [1] : vector<8x256xf32> to vector<8xf32>
    %33 = vector.shape_cast %32 : vector<8xf32> to vector<8x1xf32>
    %cst_10 = arith.constant 3.906250e-03 : f32
    %34 = vector.broadcast %cst_10 : f32 to vector<8x1xf32>
    %35 = arith.mulf %33, %34 : vector<8x1xf32>
    %36 = arith.mulf %31, %31 : vector<8x256xf32>
    %cst_11 = arith.constant dense<0.000000e+00> : vector<8xf32>
    %37 = vector.multi_reduction <add>, %36, %cst_11 [1] : vector<8x256xf32> to vector<8xf32>
    %38 = vector.shape_cast %37 : vector<8xf32> to vector<8x1xf32>
    %cst_12 = arith.constant 3.906250e-03 : f32
    %39 = vector.broadcast %cst_12 : f32 to vector<8x1xf32>
    %40 = arith.mulf %38, %39 : vector<8x1xf32>
    %41 = arith.mulf %35, %35 : vector<8x1xf32>
    %42 = arith.subf %40, %41 : vector<8x1xf32>
    %c0_13 = arith.constant 0 : index
    %c0_14 = arith.constant 0 : index
    %43 = vector.load %arg3[%c0_13, %c0_14] : memref<8x1xf32, #tpu.memory_space<vmem>>, vector<8x1xf32>
    %cst_15 = arith.constant 9.99999974E-6 : f32
    %44 = vector.broadcast %cst_15 : f32 to vector<8x1xf32>
    %45 = arith.addf %42, %44 : vector<8x1xf32>
    %46 = math.rsqrt %45 : vector<8x1xf32>
    %47 = arith.mulf %43, %46 : vector<8x1xf32>
    %c0_16 = arith.constant 0 : index
    %c0_17 = arith.constant 0 : index
    %48 = vector.load %arg4[%c0_16, %c0_17] : memref<8x1xf32, #tpu.memory_space<vmem>>, vector<8x1xf32>
    %49 = arith.mulf %35, %47 : vector<8x1xf32>
    %50 = arith.subf %48, %49 : vector<8x1xf32>
    %51 = vector.broadcast %47 : vector<8x1xf32> to vector<8x256xf32>
    %52 = arith.mulf %31, %51 : vector<8x256xf32>
    %53 = vector.broadcast %50 : vector<8x1xf32> to vector<8x256xf32>
    %54 = arith.addf %52, %53 : vector<8x256xf32>
    %cst_18 = arith.constant 0.000000e+00 : f32
    %55 = vector.broadcast %cst_18 : f32 to vector<8x256xf32>
    %56 = arith.maximumf %54, %55 : vector<8x256xf32>
    %c0_19 = arith.constant 0 : index
    %c0_20 = arith.constant 0 : index
    %57 = vector.load %arg2[%c0_19, %c0_20] : memref<8x16xf32, #tpu.memory_space<vmem>>, vector<8x16xf32>
    %c1_i32_21 = arith.constant 1 : i32
    %58 = tpu.dynamic_rotate %56 by %c1_i32_21 dim 1 : vector<8x256xf32>, i32 -> vector<8x256xf32>
    %c129_i32_22 = arith.constant 129 : i32
    %59 = tpu.dynamic_rotate %56 by %c129_i32_22 dim 1 : vector<8x256xf32>, i32 -> vector<8x256xf32>
    %60 = arith.select %19, %58, %59 : vector<8x256xi1>, vector<8x256xf32>
    %c255_i32_23 = arith.constant 255 : i32
    %61 = tpu.dynamic_rotate %56 by %c255_i32_23 dim 1 : vector<8x256xf32>, i32 -> vector<8x256xf32>
    %c127_i32_24 = arith.constant 127 : i32
    %62 = tpu.dynamic_rotate %56 by %c127_i32_24 dim 1 : vector<8x256xf32>, i32 -> vector<8x256xf32>
    %63 = arith.select %21, %61, %62 : vector<8x256xi1>, vector<8x256xf32>
    %64 = arith.addf %60, %63 : vector<8x256xf32>
    %65 = tpu.concatenate %56, %64 in 0 : vector<8x256xf32>, vector<8x256xf32> -> vector<16x256xf32>
    %cst_25 = arith.constant dense<0.000000e+00> : vector<8x256xf32>
    %66 = tpu.matmul %57, %65, %cst_25 {dimension_numbers = #tpu.dot_dimension_numbers<[1], [0], [0], [1], [0, 0, 1, 1], [], []>} : vector<8x16xf32>, vector<16x256xf32>, vector<8x256xf32> -> vector<8x256xf32>
    %cst_26 = arith.constant dense<0.000000e+00> : vector<8xf32>
    %67 = vector.multi_reduction <add>, %66, %cst_26 [1] : vector<8x256xf32> to vector<8xf32>
    %68 = vector.shape_cast %67 : vector<8xf32> to vector<8x1xf32>
    %cst_27 = arith.constant 3.906250e-03 : f32
    %69 = vector.broadcast %cst_27 : f32 to vector<8x1xf32>
    %70 = arith.mulf %68, %69 : vector<8x1xf32>
    %71 = arith.mulf %66, %66 : vector<8x256xf32>
    %cst_28 = arith.constant dense<0.000000e+00> : vector<8xf32>
    %72 = vector.multi_reduction <add>, %71, %cst_28 [1] : vector<8x256xf32> to vector<8xf32>
    %73 = vector.shape_cast %72 : vector<8xf32> to vector<8x1xf32>
    %cst_29 = arith.constant 3.906250e-03 : f32
    %74 = vector.broadcast %cst_29 : f32 to vector<8x1xf32>
    %75 = arith.mulf %73, %74 : vector<8x1xf32>
    %76 = arith.mulf %70, %70 : vector<8x1xf32>
    %77 = arith.subf %75, %76 : vector<8x1xf32>
    %c0_30 = arith.constant 0 : index
    %c0_31 = arith.constant 0 : index
    %78 = vector.load %arg5[%c0_30, %c0_31] : memref<8x1xf32, #tpu.memory_space<vmem>>, vector<8x1xf32>
    %cst_32 = arith.constant 9.99999974E-6 : f32
    %79 = vector.broadcast %cst_32 : f32 to vector<8x1xf32>
    %80 = arith.addf %77, %79 : vector<8x1xf32>
    %81 = math.rsqrt %80 : vector<8x1xf32>
    %82 = arith.mulf %78, %81 : vector<8x1xf32>
    %c0_33 = arith.constant 0 : index
    %c0_34 = arith.constant 0 : index
    %83 = vector.load %arg6[%c0_33, %c0_34] : memref<8x1xf32, #tpu.memory_space<vmem>>, vector<8x1xf32>
    %84 = arith.mulf %70, %82 : vector<8x1xf32>
    %85 = arith.subf %83, %84 : vector<8x1xf32>
    %86 = vector.broadcast %82 : vector<8x1xf32> to vector<8x256xf32>
    %87 = arith.mulf %66, %86 : vector<8x256xf32>
    %88 = vector.broadcast %85 : vector<8x1xf32> to vector<8x256xf32>
    %89 = arith.addf %87, %88 : vector<8x256xf32>
    %90 = arith.addf %89, %0 : vector<8x256xf32>
    %cst_35 = arith.constant 0.000000e+00 : f32
    %91 = vector.broadcast %cst_35 : f32 to vector<8x256xf32>
    %92 = arith.maximumf %90, %91 : vector<8x256xf32>
    %c0_36 = arith.constant 0 : index
    %c0_37 = arith.constant 0 : index
    %93 = vector.load %arg7[%c0_36, %c0_37] : memref<8x256xf32, #tpu.memory_space<vmem>>, vector<8x256xf32>
    tpu.vector_store %arg7[%c0_36, %c0_37], %92 {strides = array<i32>} : memref<8x256xf32, #tpu.memory_space<vmem>>, vector<8x256xf32>,
    return
  }
}

</mosaic_0001>

<bundles_post_ra>
// kernel: tpu_custom_call.1
= control target key start
LH: loop header
LB: loop body
LE: loop exit
PB: predicated region body
PF: predicated region fallthrough
CT: control target
= control target key end

     0   :  { %s382_s26 = smov 127   ;;  %s383_s27 = smov 1   ;;  %s531_s0 = inlined_call_operand.vmem [shape: f32[8,256], index: 0, kind: input, shape index: {}]   ;;  %s532_s1 = inlined_call_operand.vmem [shape: f32[8,16], index: 1, kind: input, shape index: {}]   ;;  %s533_s2 = inlined_call_operand.vmem [shape: f32[8,16], index: 2, kind: input, shape index: {}]   ;;  %s534_s3 = inlined_call_operand.vmem [shape: f32[8,1], index: 3, kind: input, shape index: {}]   ;;  %s535_s4 = inlined_call_operand.vmem [shape: f32[8,1], index: 4, kind: input, shape index: {}]   ;;  %s536_s5 = inlined_call_operand.vmem [shape: f32[8,1], index: 5, kind: input, shape index: {}]   ;;  %s537_s6 = inlined_call_operand.vmem [shape: f32[8,1], index: 6, kind: input, shape index: {}]   ;;  %s538_s7 = inlined_call_operand.hbm [shape: f32[8,256], index: 7, kind: output, shape index: {}]  }
   0x1   :  { %v430_v0 = vld [vmem:[%s531_s0] sm:$0xff] }
   0x2   :  { %70 = vrot.lane.b32.xlu1 %v430_v0, %s382_s26  ;;  %61 = vrot.lane.b32.xlu0 %v430_v0, %s383_s27 }
   0x3   :  { %12 = vsyncpa [#allocation3], 0  ;;  %v439_v1 = vld [vmem:[%s531_s0 + $0x8] sm:$0xff]  ;;  %v384_v2 = vmov 0.0   ;;  %v29_v3 = vlaneseq  ;;  %v60_v25 = vld [vmem:[%s532_s1] sm:$0xff]  ;;  %vm81_vm5 = vcmask 130048  }
   0x4   :  { %149 = vmatprep.mubr.f32.mxu0 %v384_v2  ;;  %277 = vmatprep.mubr.f32.mxu1 %v384_v2  ;;  %v385_v32 = vmov 0   ;;  %v168_v40 = vld [vmem:[%s534_s3] sm:$0xff]  ;;  %s386_s14 = smov [#allocation2]  }
   0x5   :  { %v445_v4 = vand.u32 127, %v29_v3  ;;  %352 = vset.pattern.permute.xlu0 %v385_v32  ;;  %353 = vset.pattern.permute.xlu1 %v385_v32  ;;  %v172_v43 = vld [vmem:[%s535_s4] sm:$0xff]  ;;  %s329_s15 = sshll.u32 %s386_s14, 4  ;;  %s330_s15 = int_to_ptr.vmem [resolvable:$true] %s329_s15 }
   0x6   :  { %72 = vrot.lane.b32.xlu1 %v439_v1, %s382_s26  ;;  %63 = vrot.lane.b32.xlu0 %v439_v1, %s383_s27  ;;  %p363_p1 = scmp.lt.s32.totalorder %s330_s15, %s330_s15 }
   0x7   :  { %v31_v5 = vadd.s32 128, %v445_v4  ;;  %vm58_vm0 = vcmp.lt.s32.totalorder %v445_v4, 127  ;;  %vm65_vm1 = vcmp.lt.s32.totalorder %v445_v4, 1  ;;  %vm56_vm2 = vcmp.ge.s32.totalorder %v445_v4, 1 }
   0x9   :  { %v43_v6 = vand.u32 127, %v31_v5 }
   0xb   :  { %vm451_vm3 = vcmp.ge.s32.totalorder %v43_v6, 1  ;;  %vm455_vm4 = vcmp.lt.s32.totalorder %v43_v6, 127 }
  0x74   :  { %v71_v7 = vpop.permute.xlu1 %70  ;;  %v62_v8 = vpop.permute.xlu0 %61 }
  0x78   :  { %v73_v11 = vpop.permute.xlu1 %72  ;;  %v64_v12 = vpop.permute.xlu0 %63 }
  0x79   :  { %v75_v13 = vsel %vm58_vm0, %v71_v7, %v73_v11  ;;  %v76_v14 = vsel %vm58_vm0, %v73_v11, %v71_v7  ;;  %v66_v15 = vsel %vm65_vm1, %v62_v8, %v64_v12  ;;  %v67_v16 = vsel %vm65_vm1, %v64_v12, %v62_v8  ;;  %v191_v11 = vld [vmem:[%s533_s2] sm:$0xff] }
  0x7a   :  { %v77_v17 = vsel %vm58_vm0, %v75_v13, %v76_v14  ;;  %v68_v18 = vsel %vm56_vm2, %v67_v16, %v66_v15  ;;  %v69_v19 = vsel %vm451_vm3, %v66_v15, %v67_v16  ;;  %v78_v20 = vsel %vm455_vm4, %v76_v14, %v75_v13 }
  0x7b   :  { %v80_v21 = vadd.f32 %v78_v20, %v69_v19  ;;  %v79_v22 = vadd.f32 %v77_v17, %v68_v18 }
  0x7d   :  { %v339_v23 = vpack.c.bf16 %v80_v21, %v439_v1  ;;  %v341_v24 = vpack.c.bf16 %v79_v22, %v430_v0  ;;  %v296_v22 = vld [vmem:[%s536_s5] sm:$0xff]  ;;  %s358_s5 = scalar_lea.vmem %s330_s15, 256 }
  0x7e   :  { %p359_p0 = scmp.ne.s32.totalorder %s330_s15, %s358_s5  ;;  %p364_p2 = scmp.lt.s32.totalorder %s358_s5, %s358_s5 }
  0x7f   :  { %340 = vmatprep.subr.bf16.mxu0 %v339_v23 }
  0x80   :  { %342 = vmatpush1.bf16.msra.mxu0 %v341_v24  ;;  %p365_p3 = por %p364_p2, %p363_p1 }
  0x82   :  { %p366_p4 = pnand %p365_p3, %p359_p0 }
  0x83   :  { %337 = vmatmul.mubr.msk.f32.vlgmr.msra.gmra.mrb[0].mxu0 %vm81_vm5, %v60_v25  ;;  %v300_v25 = vld [vmem:[%s537_s6] sm:$0xff] }
 0x156   :  { %v151_v26 = vpop.f32.mrb[0].mxu0 }
 0x157   :  { %v153_v27 = vpop.f32.mrb[1].mxu0  ;;  %v160_v28 = vmul.f32 %v151_v26, %v151_v26 }
 0x158   :  { %v161_v29 = vmul.f32 %v153_v27, %v153_v27  ;;  %v156_v30 = vadd.f32 %v153_v27, %v151_v26 }
 0x15a   :  { %157 = vadd.xlane.f32.xlu0 %v156_v30  ;;  %v162_v31 = vadd.f32 %v161_v29, %v160_v28 }
 0x15c   :  { %163 = vadd.xlane.f32.xlu1 %v162_v31 }
 0x1e7   :  { %v158_v33 = vpop.xlane.xlu0 %157 }
 0x1e8   :  { %v159_v34 = vmul.f32 0.00390625, %v158_v33 }
 0x1e9   :  { %v164_v35 = vpop.xlane.xlu1 %163 }
 0x1ea   :  { %v166_v36 = vmul.f32 %v159_v34, %v159_v34  ;;  %v165_v37 = vmul.f32 0.00390625, %v164_v35 }
 0x1ec   :  { %v167_v38 = vsub.f32 %v165_v37, %v166_v36 }
 0x1ee   :  { %v169_v39 = vadd.f32 1e-05, %v167_v38 }
 0x1f0   :  { %354 = vrsqrt.f32 %v169_v39 }
 0x1fa   :  { %v355_v41 = vpop.eup %354 }
 0x1fb   :  { %v171_v42 = vmul.f32 %v355_v41, %v168_v40 }
 0x1fd   :  { %177 = vperm.xlu0 %352, %v171_v42   ;;  %v173_v44 = vmul.f32 %v171_v42, %v159_v34 }
 0x1ff   :  { %v174_v45 = vsub.f32 %v172_v43, %v173_v44 }
 0x201   :  { %184 = vperm.xlu1 %353, %v174_v45  }
 0x27c   :  { %v178_v46 = vpop.permute.xlu0 %177 }
 0x27d   :  { %v180_v47 = vmul.f32 %v178_v46, %v151_v26  ;;  %v181_v49 = vmul.f32 %v178_v46, %v153_v27 }
 0x280   :  { %v185_v48 = vpop.permute.xlu1 %184 }
 0x281   :  { %v187_v50 = vadd.f32 %v185_v48, %v180_v47  ;;  %v188_v51 = vadd.f32 %v185_v48, %v181_v49 }
 0x283   :  { %v189_v52 = vmax.f32 %v187_v50, 0.0  ;;  %v190_v53 = vmax.f32 %v188_v51, 0.0 }
 0x285   :  { %192 = vrot.lane.b32.xlu1 %v189_v52, %s383_s27 }
 0x289   :  { %194 = vrot.lane.b32.xlu1 %v190_v53, %s383_s27 }
 0x28d   :  { %200 = vrot.lane.b32.xlu1 %v189_v52, %s382_s26 }
 0x291   :  { %202 = vrot.lane.b32.xlu1 %v190_v53, %s382_s26 }
 0x2f7   :  { %v193_v54 = vpop.permute.xlu1 %192 }
 0x2fb   :  { %v195_v55 = vpop.permute.xlu1 %194 }
 0x2fc   :  { %v196_v57 = vsel %vm65_vm1, %v193_v54, %v195_v55  ;;  %v197_v58 = vsel %vm65_vm1, %v195_v55, %v193_v54 }
 0x2fd   :  { %v198_v62 = vsel %vm56_vm2, %v197_v58, %v196_v57  ;;  %v199_v2 = vsel %vm451_vm3, %v196_v57, %v197_v58 }
 0x2ff   :  { %v201_v56 = vpop.permute.xlu1 %200 }
 0x303   :  { %v203_v59 = vpop.permute.xlu1 %202 }
 0x304   :  { %v204_v60 = vsel %vm58_vm0, %v201_v56, %v203_v59  ;;  %v205_v61 = vsel %vm58_vm0, %v203_v59, %v201_v56 }
 0x305   :  { %v206_v63 = vsel %vm58_vm0, %v204_v60, %v205_v61  ;;  %v207_v3 = vsel %vm455_vm4, %v205_v61, %v204_v60 }
 0x306   :  { %v209_v5 = vadd.f32 %v207_v3, %v199_v2  ;;  %v208_v6 = vadd.f32 %v206_v63, %v198_v62 }
 0x308   :  { %v343_v7 = vpack.c.bf16 %v209_v5, %v190_v53  ;;  %v345_v8 = vpack.c.bf16 %v208_v6, %v189_v52 }
 0x30a   :  { %344 = vmatprep.subr.bf16.mxu1 %v343_v7 }
 0x30b   :  { %346 = vmatpush1.bf16.msra.mxu1 %v345_v8 }
 0x30e   :  { %338 = vmatmul.mubr.msk.f32.vlgmr.msra.gmra.mrb[0].mxu1 %vm81_vm5, %v191_v11 }
 0x3e1   :  { %v279_v4 = vpop.f32.mrb[0].mxu1 }
 0x3e2   :  { %v281_v12 = vpop.f32.mrb[1].mxu1  ;;  %v288_v13 = vmul.f32 %v279_v4, %v279_v4 }
 0x3e3   :  { %v289_v9 = vmul.f32 %v281_v12, %v281_v12  ;;  %v284_v14 = vadd.f32 %v281_v12, %v279_v4 }
 0x3e5   :  { %285 = vadd.xlane.f32.xlu1 %v284_v14  ;;  %v290_v10 = vadd.f32 %v289_v9, %v288_v13 }
 0x3e7   :  { %291 = vadd.xlane.f32.xlu0 %v290_v10 }
 0x472   :  { %v286_v15 = vpop.xlane.xlu1 %285 }
 0x473   :  { %v287_v16 = vmul.f32 0.00390625, %v286_v15 }
 0x474   :  { %v292_v17 = vpop.xlane.xlu0 %291 }
 0x475   :  { %v294_v18 = vmul.f32 %v287_v16, %v287_v16  ;;  %v293_v19 = vmul.f32 0.00390625, %v292_v17 }
 0x477   :  { %v295_v20 = vsub.f32 %v293_v19, %v294_v18 }
 0x479   :  { %v297_v21 = vadd.f32 1e-05, %v295_v20 }
 0x47b   :  { %356 = vrsqrt.f32 %v297_v21 }
 0x485   :  { %v357_v23 = vpop.eup %356 }
 0x486   :  { %v299_v24 = vmul.f32 %v357_v23, %v296_v22 }
 0x488   :  { %305 = vperm.xlu1 %353, %v299_v24   ;;  %v301_v26 = vmul.f32 %v299_v24, %v287_v16 }
 0x48a   :  { %v302_v27 = vsub.f32 %v300_v25, %v301_v26 }
 0x48c   :  { %312 = vperm.xlu0 %352, %v302_v27  }
 0x507   :  { %v306_v28 = vpop.permute.xlu1 %305 }
 0x508   :  { %v308_v29 = vmul.f32 %v306_v28, %v279_v4  ;;  %v309_v30 = vmul.f32 %v306_v28, %v281_v12 }
 0x50b   :  { %v313_v31 = vpop.permute.xlu0 %312 }
 0x50c   :  { %v315_v32 = vadd.f32 %v313_v31, %v308_v29  ;;  %v316_v33 = vadd.f32 %v313_v31, %v309_v30 }
 0x50e   :  { %v317_v34 = vadd.f32 %v315_v32, %v430_v0  ;;  %v318_v35 = vadd.f32 %v316_v33, %v439_v1 }
 0x510   :  { %v319_v36 = vmax.f32 %v317_v34, 0.0  ;;  %v320_v37 = vmax.f32 %v318_v35, 0.0 }
 0x512   :  { %321 = vst [vmem:[#allocation2] sm:$0xff] %v319_v36  ;;  %322 = vst [vmem:[#allocation2 + $0x8] sm:$0xff] %v320_v37 }
 0x513   :  { %369 = shalt.err (!%p366_p4)
}
 0x514   :  { %s370_s17 = scalar_lea.hbm %s538_s7, 256 }
 0x515   :  { %p371_p5 = scmp.ne.s32.totalorder %s538_s7, %s370_s17  ;;  %p374_p6 = scmp.lt.u32.totalorder %s370_s17, %s538_s7 }
 0x517   :  { %p376_p7 = pnand %p374_p6, %p371_p5 }
 0x519   :  { %379 = shalt.err (!%p376_p7)
}
 0x51a   :  { %332 = dma.vmem_to_hbm [thread:$0]  %s330_s15, 256, %s538_s7, [#allocation3]  }
 0x51b   :  { %380 = dma.done.wait [#allocation3], 256  }
 0x51c   :  { %381 = vsyncadd [#allocation3], 4294967040 }
 0x51d   :  { %336 = vsyncpa [#allocation3], 1 }

</bundles_post_ra>
